<compile_context>
chip_gen: v7x
topology: tpu7x:2x2x1
jax: 0.10.0
libtpu: 0.0.40
codegen_flags: <defaults>
</compile_context>

<pallas_src>
import functools

import jax
import jax.numpy as jnp
from jax import lax
from jax.experimental import pallas as pl
from jax.experimental.pallas import tpu as pltpu


# ----------------------------------------------------------------------------- helpers
def _pick_tile(dim, target, align):
    """Largest tile <= target that is a multiple of `align` and evenly divides `dim`.
    Falls back to the full dimension (always a legal Pallas block size)."""
    if dim <= target:
        return dim
    t = (target // align) * align
    while t >= align:
        if dim % t == 0:
            return t
        t -= align
    return dim


# ------------------------------------------------------------------------ tiled linear
def _linear_kernel(x_ref, w_ref, b_ref, o_ref, acc_ref):
    k = pl.program_id(2)

    @pl.when(k == 0)
    def _():
        acc_ref[...] = jnp.zeros_like(acc_ref)

    acc_ref[...] += jnp.dot(x_ref[...], w_ref[...], preferred_element_type=jnp.float32)

    @pl.when(k == pl.num_programs(2) - 1)
    def _():
        o_ref[...] = (acc_ref[...] + b_ref[...].astype(jnp.float32)).astype(o_ref.dtype)


def pallas_linear(x2d, w, b, *, tm_target=512, tn_target=256, tk_target=256):
    """y = x2d @ w + b with a pipelined, K-accumulating Pallas matmul."""
    M, K = x2d.shape
    K2, Nout = w.shape
    assert K == K2
    b2d = b.reshape(1, Nout)

    tm = _pick_tile(M, tm_target, 8)
    tn = _pick_tile(Nout, tn_target, 128)
    tk = _pick_tile(K, tk_target, 128)
    grid = (M // tm, Nout // tn, K // tk)  # reduction axis last

    return pl.pallas_call(
        _linear_kernel,
        out_shape=jax.ShapeDtypeStruct((M, Nout), x2d.dtype),
        grid=grid,
        in_specs=[
            pl.BlockSpec((tm, tk), lambda i, j, k: (i, k)),
            pl.BlockSpec((tk, tn), lambda i, j, k: (k, j)),
            pl.BlockSpec((1, tn), lambda i, j, k: (0, j)),
        ],
        out_specs=pl.BlockSpec((tm, tn), lambda i, j, k: (i, j)),
        scratch_shapes=[pltpu.VMEM((tm, tn), jnp.float32)],
        compiler_params=pltpu.CompilerParams(
            dimension_semantics=("parallel", "parallel", "arbitrary")
        ),
    )(x2d, w, b2d)


# -------------------------------------------------------------------------- attention
def _attn_kernel(qkv_ref, o_ref, *, num_heads, scale):
    # qkv_ref: (1, N, 3C) for one batch; o_ref: (1, N, C)
    qkv = qkv_ref[0]                      # (N, 3C) — single block load, no host transpose
    C = qkv.shape[-1] // 3
    D = C // num_heads

    head_outs = []
    for h in range(num_heads):            # static loop over heads (lane-dense output tile)
        q = qkv[:, h * D:(h + 1) * D]                     # (N, D)
        k = qkv[:, C + h * D:C + (h + 1) * D]             # (N, D)
        v = qkv[:, 2 * C + h * D:2 * C + (h + 1) * D]     # (N, D)

        # q @ k^T without materializing a transpose of k.
        s = lax.dot_general(
            q, k, (((1,), (1,)), ((), ())), preferred_element_type=jnp.float32
        ) * scale                                          # (N, N)

        m = jnp.max(s, axis=-1, keepdims=True)
        p = jnp.exp(s - m)
        l = jnp.sum(p, axis=-1, keepdims=True)
        o = jnp.dot(p.astype(v.dtype), v, preferred_element_type=jnp.float32)  # (N, D)
        # Fold softmax denominator into the result; approx reciprocal uses the EUP slot.
        o = o * pl.reciprocal(l, approx=True)
        head_outs.append(o)

    # One lane-dense (N, C) store per batch step, already in (B, N, C) layout.
    o_ref[0] = jnp.concatenate(head_outs, axis=-1).astype(o_ref.dtype)


def pallas_attention(qkv, num_heads, scale):
    # qkv: (B, N, 3C) straight out of the qkv projection (no reshape/transpose on host).
    B, N, C3 = qkv.shape
    C = C3 // 3
    kern = functools.partial(_attn_kernel, num_heads=num_heads, scale=scale)
    return pl.pallas_call(
        kern,
        out_shape=jax.ShapeDtypeStruct((B, N, C), qkv.dtype),
        grid=(B,),
        in_specs=[pl.BlockSpec((1, N, C3), lambda b: (b, 0, 0))],
        out_specs=pl.BlockSpec((1, N, C), lambda b: (b, 0, 0)),
        compiler_params=pltpu.CompilerParams(dimension_semantics=("parallel",)),
    )(qkv)


# ------------------------------------------------------------------------ full forward
def attention_encoder_forward(x, params, num_heads):
    """Equivalent of Attention_Encoder.forward. x: (B, N, C)."""
    B, N, C = x.shape
    D = C // num_heads
    scale = D ** (-0.5)

    x2d = x.reshape(B * N, C)

    # qkv projection (bias is zero since qkv_bias=False; kept for generality)
    qkv = pallas_linear(x2d, params["w_qkv"], params["b_qkv"])       # (B*N, 3C)
    qkv = qkv.reshape(B, N, 3 * C)                                   # free reshape, no transpose

    o = pallas_attention(qkv, num_heads, scale)                      # (B, N, C)

    # output projection (has bias)
    out = pallas_linear(o.reshape(B * N, C), params["w_proj"], params["b_proj"])
    return out.reshape(B, N, C)


# -------------------------------------------------------------------------- reference
def reference_forward(x, params, num_heads):
    B, N, C = x.shape
    D = C // num_heads
    scale = D ** (-0.5)
    qkv = x @ params["w_qkv"] + params["b_qkv"]
    qkv = qkv.reshape(B, N, 3, num_heads, D).transpose(2, 0, 3, 1, 4)
    q, k, v = qkv[0], qkv[1], qkv[2]
    attn = (q @ jnp.swapaxes(k, -2, -1)) * scale
    attn = jax.nn.softmax(attn, axis=-1)
    o = (attn @ v).transpose(0, 2, 1, 3).reshape(B, N, C)
    return o @ params["w_proj"] + params["b_proj"]


# -------------------------------------------------------------------------------- main
if __name__ == "__main__":
    B, N, C = 2, 16, 32
    num_heads = 8

    key = jax.random.PRNGKey(0)
    k_x, k_qkv, k_proj, k_pb = jax.random.split(key, 4)

    x = jax.random.normal(k_x, (B, N, C), dtype=jnp.float32)

    params = {
        # nn.Linear(dim, dim*3, bias=False) -> stored (in, out); zero bias matches no-bias
        "w_qkv": jax.random.normal(k_qkv, (C, 3 * C), dtype=jnp.float32) * 0.02,
        "b_qkv": jnp.zeros((3 * C,), dtype=jnp.float32),
        # nn.Linear(dim, dim) with bias
        "w_proj": jax.random.normal(k_proj, (C, C), dtype=jnp.float32) * 0.02,
        "b_proj": jax.random.normal(k_pb, (C,), dtype=jnp.float32) * 0.02,
    }

    out = attention_encoder_forward(x, params, num_heads)
    out = jax.block_until_ready(out)

    ref = reference_forward(x, params, num_heads)
    assert out.shape == (B, N, C)
    # approx reciprocal in the softmax denominator slightly loosens the tolerance
    assert jnp.allclose(out, ref, atol=2e-3, rtol=2e-3), "mismatch vs reference"

    print("KERNEL_OK")
</pallas_src>

<mosaic_0001>
module attributes {stable_mosaic.version = 11 : i64} {
  func.func @_linear_kernel(%arg0: i32, %arg1: i32, %arg2: i32, %arg3: memref<32x32xf32, #tpu.memory_space<vmem>>, %arg4: memref<32x96xf32, #tpu.memory_space<vmem>>, %arg5: memref<1x96xf32, #tpu.memory_space<vmem>>, %arg6: memref<32x96xf32, #tpu.memory_space<vmem>>, %arg7: memref<32x96xf32, #tpu.memory_space<vmem>>) attributes {dimension_semantics = [#tpu.dimension_semantics<parallel>, #tpu.dimension_semantics<parallel>, #tpu.dimension_semantics<arbitrary>], iteration_bounds = array<i64: 1, 1, 1>, scalar_prefetch = 0 : i64, scratch_operands = 1 : i64, tpu.core_type = #tpu.core_type<tc>, window_params = [{transform_indices = @transform_0, window_bounds = array<i64: 32, 32>}, {transform_indices = @transform_1, window_bounds = array<i64: 32, 96>}, {transform_indices = @transform_2, window_bounds = array<i64: 1, 96>}, {transform_indices = @transform_3, window_bounds = array<i64: 32, 96>}]} {
    %c0_i32 = arith.constant 0 : i32
    %0 = arith.cmpi eq, %arg2, %c0_i32 : i32
    %1 = arith.extui %0 : i1 to i32
    %c0_i32_0 = arith.constant 0 : i32
    %2 = arith.cmpi ne, %1, %c0_i32_0 : i32
    scf.if %2 {
      %cst_10 = arith.constant 0.000000e+00 : f32
      %12 = vector.broadcast %cst_10 : f32 to vector<32x96xf32>
      %c0_11 = arith.constant 0 : index
      %c0_12 = arith.constant 0 : index
      %13 = vector.load %arg7[%c0_11, %c0_12] : memref<32x96xf32, #tpu.memory_space<vmem>>, vector<32x96xf32>
      tpu.vector_store %arg7[%c0_11, %c0_12], %12 {strides = array<i32>} : memref<32x96xf32, #tpu.memory_space<vmem>>, vector<32x96xf32>,
    } else {
    }
    %c0 = arith.constant 0 : index
    %c0_1 = arith.constant 0 : index
    %3 = vector.load %arg7[%c0, %c0_1] : memref<32x96xf32, #tpu.memory_space<vmem>>, vector<32x96xf32>
    %c0_2 = arith.constant 0 : index
    %c0_3 = arith.constant 0 : index
    %4 = vector.load %arg3[%c0_2, %c0_3] : memref<32x32xf32, #tpu.memory_space<vmem>>, vector<32x32xf32>
    %c0_4 = arith.constant 0 : index
    %c0_5 = arith.constant 0 : index
    %5 = vector.load %arg4[%c0_4, %c0_5] : memref<32x96xf32, #tpu.memory_space<vmem>>, vector<32x96xf32>
    %cst = arith.constant dense<0.000000e+00> : vector<32x96xf32>
    %6 = tpu.matmul %4, %5, %cst {dimension_numbers = #tpu.dot_dimension_numbers<[1], [0], [0], [1], [0, 0, 1, 1], [], []>} : vector<32x32xf32>, vector<32x96xf32>, vector<32x96xf32> -> vector<32x96xf32>
    %7 = arith.addf %3, %6 : vector<32x96xf32>
    %c0_6 = arith.constant 0 : index
    %c0_7 = arith.constant 0 : index
    %8 = vector.load %arg7[%c0_6, %c0_7] : memref<32x96xf32, #tpu.memory_space<vmem>>, vector<32x96xf32>
    tpu.vector_store %arg7[%c0_6, %c0_7], %7 {strides = array<i32>} : memref<32x96xf32, #tpu.memory_space<vmem>>, vector<32x96xf32>,
    %c0_i32_8 = arith.constant 0 : i32
    %9 = arith.cmpi eq, %arg2, %c0_i32_8 : i32
    %10 = arith.extui %9 : i1 to i32
    %c0_i32_9 = arith.constant 0 : i32
    %11 = arith.cmpi ne, %10, %c0_i32_9 : i32
    scf.if %11 {
      %c0_10 = arith.constant 0 : index
      %c0_11 = arith.constant 0 : index
      %12 = vector.load %arg7[%c0_10, %c0_11] : memref<32x96xf32, #tpu.memory_space<vmem>>, vector<32x96xf32>
      %c0_12 = arith.constant 0 : index
      %c0_13 = arith.constant 0 : index
      %13 = vector.load %arg5[%c0_12, %c0_13] : memref<1x96xf32, #tpu.memory_space<vmem>>, vector<1x96xf32>
      %14 = vector.broadcast %13 : vector<1x96xf32> to vector<32x96xf32>
      %15 = arith.addf %12, %14 : vector<32x96xf32>
      %c0_14 = arith.constant 0 : index
      %c0_15 = arith.constant 0 : index
      %16 = vector.load %arg6[%c0_14, %c0_15] : memref<32x96xf32, #tpu.memory_space<vmem>>, vector<32x96xf32>
      tpu.vector_store %arg6[%c0_14, %c0_15], %15 {strides = array<i32>} : memref<32x96xf32, #tpu.memory_space<vmem>>, vector<32x96xf32>,
    } else {
    }
    return
  }
  func.func @transform_0(%arg0: i32, %arg1: i32, %arg2: i32) -> (i32, i32) {
    %c0_i32 = arith.constant 0 : i32
    return %arg0, %arg2 : i32, i32
  }
  func.func @transform_1(%arg0: i32, %arg1: i32, %arg2: i32) -> (i32, i32) {
    %c0_i32 = arith.constant 0 : i32
    return %arg2, %arg1 : i32, i32
  }
  func.func @transform_2(%arg0: i32, %arg1: i32, %arg2: i32) -> (i32, i32) {
    %c0_i32 = arith.constant 0 : i32
    %c0_i32_0 = arith.constant 0 : i32
    return %c0_i32, %arg1 : i32, i32
  }
  func.func @transform_3(%arg0: i32, %arg1: i32, %arg2: i32) -> (i32, i32) {
    %c0_i32 = arith.constant 0 : i32
    return %arg0, %arg1 : i32, i32
  }
}

</mosaic_0001>

<bundles_post_ra>
// kernel: tpu_custom_call.1
= control target key start
LH: loop header
LB: loop body
LE: loop exit
PB: predicated region body
PF: predicated region fallthrough
CT: control target
= control target key end

     0   :  { %8 = vsyncpa [#allocation4], 0  ;;  %s418_s0 = inlined_call_operand.hbm [shape: f32[32,32], index: 0, kind: input, shape index: {}]   ;;  %s419_s1 = inlined_call_operand.hbm [shape: f32[32,96], index: 1, kind: input, shape index: {}]   ;;  %s420_s2 = inlined_call_operand.vmem [shape: f32[1,96], index: 2, kind: input, shape index: {}]   ;;  %s421_s3 = inlined_call_operand.hbm [shape: f32[32,96], index: 3, kind: output, shape index: {}]  }
   0x1   :  { %9 = vsyncpa [#allocation7], 0 }
   0x2   :  { %10 = vsyncpa [#allocation5], 0  ;;  %s328_s12 = smov [#allocation3]   ;;  %s256_s16 = scalar_lea.hbm %s418_s0, 512 }
   0x3   :  { %s16_s13 = sshll.u32 %s328_s12, 4  ;;  %p257_p0 = scmp.ne.s32.totalorder %s418_s0, %s256_s16  ;;  %s17_s13 = int_to_ptr.vmem [resolvable:$true] %s16_s13 }
   0x4   :  { %p260_p1 = scmp.lt.u32.totalorder %s256_s16, %s418_s0 }
   0x6   :  { %p262_p2 = pnand %p260_p1, %p257_p0 }
   0x8   :  { %265 = shalt.err (!%p262_p2)
}
   0x9   :  { %s266_s21 = scalar_lea.vmem %s17_s13, 512  ;;  %p271_p4 = scmp.lt.s32.totalorder %s17_s13, %s17_s13 }
   0xa   :  { %p267_p3 = scmp.ne.s32.totalorder %s17_s13, %s266_s21  ;;  %p272_p5 = scmp.lt.s32.totalorder %s266_s21, %s266_s21 }
   0xc   :  { %p273_p6 = por %p272_p5, %p271_p4 }
   0xe   :  { %p274_p7 = pnand %p273_p6, %p267_p3 }
  0x10   :  { %277 = shalt.err (!%p274_p7)
}
  0x11   :  { %s329_s22 = smov 128   ;;  %s330_s23 = smov 8  }
  0x12   :  { %22 = dma.hbm_to_vmem [thread:$0]  %s418_s0, 512, %s17_s13, [#allocation4], %s329_s22, %s329_s22, %s330_s23  }
  0x13   :  { %s331_s26 = smov [#allocation6]   ;;  %s278_s30 = scalar_lea.hbm %s419_s1, 512 }
  0x14   :  { %s28_s27 = sshll.u32 %s331_s26, 4  ;;  %p279_p8 = scmp.ne.s32.totalorder %s419_s1, %s278_s30  ;;  %s29_s27 = int_to_ptr.vmem [resolvable:$true] %s28_s27 }
  0x15   :  { %p282_p9 = scmp.lt.u32.totalorder %s278_s30, %s419_s1 }
  0x17   :  { %p284_p10 = pnand %p282_p9, %p279_p8 }
  0x19   :  { %287 = shalt.err (!%p284_p10)
}
  0x1a   :  { %s288_s8 = scalar_lea.vmem %s29_s27, 512  ;;  %p293_p12 = scmp.lt.s32.totalorder %s29_s27, %s29_s27 }
  0x1b   :  { %p289_p11 = scmp.ne.s32.totalorder %s29_s27, %s288_s8  ;;  %p294_p13 = scmp.lt.s32.totalorder %s288_s8, %s288_s8 }
  0x1d   :  { %p295_p0 = por %p294_p13, %p293_p12 }
  0x1f   :  { %p296_p1 = pnand %p295_p0, %p289_p11 }
  0x21   :  { %299 = shalt.err (!%p296_p1)
}
  0x22   :  { %34 = dma.hbm_to_vmem [thread:$0]  %s419_s1, 512, %s29_s27, [#allocation7], %s329_s22, %s329_s22, %s330_s23  }
  0x23   :  { %322 = dma.done.wait [#allocation4], 512  }
  0x24   :  { %323 = vsyncadd [#allocation4], 4294966784 }
  0x25   :  { %324 = dma.done.wait [#allocation7], 512  }
  0x26   :  { %325 = vsyncadd [#allocation7], 4294966784  ;;  %vm47_vm0 = vcmask 785408   ;;  %v332_v0 = vmov 0.0   ;;  %vm64_vm1 = vcmask 261120   ;;  %v60_v1 = vld [vmem:[#allocation6] sm:$0xff] }
  0x27   :  { %49 = vst.msk [vmem:[#allocation2 + $0x8] sm:$0xff] %vm47_vm0, %v332_v0  ;;  %48 = vst.msk [vmem:[#allocation2] sm:$0xff] %vm47_vm0, %v332_v0  ;;  %v61_v2 = vld [vmem:[#allocation6 + $0x8] sm:$0xff]  ;;  %v62_v3 = vld [vmem:[#allocation6 + $0x10] sm:$0xff]  ;;  %s333_s11 = smov [#allocation8]  }
  0x28   :  { %50 = vst.msk [vmem:[#allocation2 + $0x10] sm:$0xff] %vm47_vm0, %v332_v0  ;;  %51 = vst.msk [vmem:[#allocation2 + $0x18] sm:$0xff] %vm47_vm0, %v332_v0  ;;  %v238_v4 = vpack.c.bf16 %v61_v2, %v60_v1  ;;  %v63_v5 = vld [vmem:[#allocation6 + $0x18] sm:$0xff]  ;;  %v56_v6 = vld [vmem:[#allocation3] sm:$0xff]  ;;  %s198_s12 = sshll.u32 %s333_s11, 4  ;;  %s199_s12 = int_to_ptr.vmem [resolvable:$true] %s198_s12 }
  0x29   :  { %v58_v7 = vld [vmem:[#allocation3 + $0x10] sm:$0xff]  ;;  %v242_v8 = vpack.c.bf16 %v63_v5, %v62_v3  ;;  %232 = vmatprep.mubr.msk.f32.mxu0 %vm64_vm1, %v56_v6  ;;  %v57_v9 = vld [vmem:[#allocation3 + $0x8] sm:$0xff]  ;;  %v59_v10 = vld [vmem:[#allocation3 + $0x18] sm:$0xff]  ;;  %p305_p3 = scmp.lt.s32.totalorder %s199_s12, %s199_s12 }
  0x2a   :  { %235 = vmatprep.mubr.msk.f32.mxu1 %vm64_vm1, %v58_v7  ;;  %239 = vmatprep.subr.bf16.mxu0 %v238_v4  ;;  %v215_v23 = vld [vmem:[%s420_s2] ss:$0 sm:$0xff]  ;;  %s300_s2 = scalar_lea.vmem %s199_s12, 512 }
  0x2b   :  { %246 = vmatprep.subr.bf16.mxu1 %v238_v4  ;;  %241 = vmatpush3.bf16.msra.mxu0 %v238_v4  ;;  %p301_p2 = scmp.ne.s32.totalorder %s199_s12, %s300_s2  ;;  %p306_p4 = scmp.lt.s32.totalorder %s300_s2, %s300_s2 }
  0x2c   :  { %248 = vmatpush3.bf16.msra.mxu1 %v238_v4  ;;  %243 = vmatprep.subr.bf16.mxu0 %v242_v8 }
  0x2d   :  { %247 = vmatprep.subr.bf16.mxu1 %v242_v8  ;;  %p307_p5 = por %p306_p4, %p305_p3 }
  0x2e   :  { %v53_v11 = vld [vmem:[#allocation2 + $0x8] sm:$0xff]  ;;  %v52_v13 = vld [vmem:[#allocation2] sm:$0xff] }
  0x2f   :  { %245 = vmatpush3.bf16.msra.mxu0 %v242_v8  ;;  %v55_v12 = vld [vmem:[#allocation2 + $0x18] sm:$0xff]  ;;  %v54_v14 = vld [vmem:[#allocation2 + $0x10] sm:$0xff]  ;;  %p308_p6 = pnand %p307_p5, %p301_p2 }
  0x30   :  { %249 = vmatpush3.bf16.msra.mxu1 %v242_v8 }
  0x32   :  { %233 = vmatmul.mubr.msk.f32.vlgmr.msra.gmra.mrb[0].mxu0 %vm64_vm1, %v57_v9 }
  0x33   :  { %236 = vmatmul.mubr.msk.f32.vlgmr.msra.gmra.mrb[0].mxu1 %vm64_vm1, %v59_v10 }
 0x105   :  { %v234_v15 = vpop.f32.mrb[0].mxu0 }
 0x106   :  { %v237_v16 = vpop.f32.mrb[0].mxu1  ;;  %v163_v17 = vadd.f32 %v234_v15, %v53_v11  ;;  %v143_v19 = vpop.f32.mrb[1].mxu0 }
 0x107   :  { %v165_v18 = vadd.f32 %v237_v16, %v55_v12  ;;  %v153_v20 = vpop.f32.mrb[1].mxu1  ;;  %v162_v21 = vadd.f32 %v143_v19, %v52_v13 }
 0x108   :  { %v164_v22 = vadd.f32 %v153_v20, %v54_v14  ;;  %168 = vst.msk [vmem:[#allocation2 + $0x8] sm:$0xff] %vm47_vm0, %v163_v17 }
 0x109   :  { %170 = vst.msk [vmem:[#allocation2 + $0x18] sm:$0xff] %vm47_vm0, %v165_v18  ;;  %167 = vst.msk [vmem:[#allocation2] sm:$0xff] %vm47_vm0, %v162_v21 }
 0x10a   :  { %169 = vst.msk [vmem:[#allocation2 + $0x10] sm:$0xff] %vm47_vm0, %v164_v22 }
 0x10f   :  { %v175_v24 = vld [vmem:[#allocation2 + $0x8] sm:$0xff] }
 0x110   :  { %v177_v25 = vld [vmem:[#allocation2 + $0x18] sm:$0xff]  ;;  %v174_v26 = vld [vmem:[#allocation2] sm:$0xff]  ;;  %v186_v28 = vadd.f32 %v215_v23, %v175_v24 }
 0x111   :  { %v176_v27 = vld [vmem:[#allocation2 + $0x10] sm:$0xff]  ;;  %v188_v29 = vadd.f32 %v215_v23, %v177_v25  ;;  %v185_v30 = vadd.f32 %v215_v23, %v174_v26 }
 0x112   :  { %v187_v31 = vadd.f32 %v215_v23, %v176_v27  ;;  %190 = vst.msk [vmem:[#allocation8 + $0x8] sm:$0xff] %vm47_vm0, %v186_v28 }
 0x113   :  { %192 = vst.msk [vmem:[#allocation8 + $0x18] sm:$0xff] %vm47_vm0, %v188_v29  ;;  %189 = vst.msk [vmem:[#allocation8] sm:$0xff] %vm47_vm0, %v185_v30 }
 0x114   :  { %191 = vst.msk [vmem:[#allocation8 + $0x10] sm:$0xff] %vm47_vm0, %v187_v31 }
 0x115   :  { %311 = shalt.err (!%p308_p6)
}
 0x116   :  { %s312_s15 = scalar_lea.hbm %s421_s3, 512 }
 0x117   :  { %p313_p7 = scmp.ne.s32.totalorder %s421_s3, %s312_s15  ;;  %p316_p8 = scmp.lt.u32.totalorder %s312_s15, %s421_s3 }
 0x119   :  { %p318_p9 = pnand %p316_p8, %p313_p7 }
 0x11b   :  { %321 = shalt.err (!%p318_p9)
}
 0x11c   :  { %204 = dma.vmem_to_hbm [thread:$0]  %s199_s12, 512, %s421_s3, [#allocation5], %s329_s22, %s329_s22, %s330_s23  }
 0x11d   :  { %326 = dma.done.wait [#allocation5], 512  }
 0x11e   :  { %327 = vsyncadd [#allocation5], 4294966784 }
 0x11f   :  { %208 = vsyncpa [#allocation4], 1 }
 0x120   :  { %209 = vsyncpa [#allocation7], 1 }
 0x121   :  { %210 = vsyncpa [#allocation5], 1 }

</bundles_post_ra>
